<compile_context>
chip_gen: v5e
topology: v5e:2x2
jax: 0.10.0
libtpu: 0.0.40
codegen_flags: <defaults>
</compile_context>

<pallas_src>
import numpy as np
import jax
import jax.numpy as jnp
from jax.experimental import pallas as pl
from jax.experimental.pallas import tpu as pltpu


# ------------------------------------------------------------------ kernel ---
def cnn_mlp_kernel(x_ref, mcat_ref, bcat_ref,
                   w1_ref, b1_ref, w2_ref, b2_ref, w3_ref, b3_ref,
                   out_ref):
    x = x_ref[...]                                                   # (TB, L)

    # conv1 at even|odd output positions in one lane-dense matmul, + bias
    y = jnp.dot(x, mcat_ref[...], preferred_element_type=jnp.float32) \
        + bcat_ref[...]                                              # (TB, 2*F)

    # maxpool(2,2) via lane-half swap on the XLU, then ReLU.
    # Only the first F lanes are meaningful; the second half is a duplicate
    # and is nulled by the zero-padded rows of fc1's weight.
    half = mcat_ref.shape[1] // 2
    y_sw = pltpu.roll(y, shift=half, axis=1)
    h = jnp.maximum(jnp.maximum(y, y_sw), 0.0)                       # (TB, 2*F)

    # fc1 + relu2  (w1 zero-padded on rows F..2F-1, so this is exact)
    h1 = jnp.maximum(
        jnp.dot(h, w1_ref[...], preferred_element_type=jnp.float32) + b1_ref[...],
        0.0)
    # fc2 + relu3
    h2 = jnp.maximum(
        jnp.dot(h1, w2_ref[...], preferred_element_type=jnp.float32) + b2_ref[...],
        0.0)
    # fc3 -> 128 lane-padded logits (padded lanes carry -1e30 from b3's pad)
    logits = jnp.dot(h2, w3_ref[...], preferred_element_type=jnp.float32) + b3_ref[...]

    # softmax over dim=1: padded lanes contribute exp(-huge) == 0 exactly.
    m = jnp.max(logits, axis=1, keepdims=True)
    e = jnp.exp(logits - m)
    s = jnp.sum(e, axis=1, keepdims=True)
    r = pl.reciprocal(s, approx=True)       # EUP slot (free vs VPU/MXU)
    r = r * (2.0 - s * r)                   # one Newton step: ~2e-7 rel error
    out_ref[...] = e * r


# ----------------------------------------------------------------- wrapper ---
def build_conv_as_matmul(wc, bc, input_length):
    """Fold Conv1d(1->C, k=3, pad=1) into one concatenated banded matrix.

    Returns M_cat of shape (L, 2*C*L//2) whose left block's columns are conv
    outputs at even positions and right block at odd positions (channel-major,
    matching x.view(B, -1)), plus the matching flat bias (1, 2*C*L//2).
    """
    C, K = wc.shape           # (8, 3)
    L = input_length
    Lh = L // 2
    M = np.zeros((L, C, L), np.float32)
    for c in range(C):
        for l in range(L):
            for k in range(K):
                i = l + k - 1            # padding = 1
                if 0 <= i < L:
                    M[i, c, l] = wc[c, k]
    M_even = M[:, :, 0::2].reshape(L, C * Lh)
    M_odd = M[:, :, 1::2].reshape(L, C * Lh)
    M_cat = np.concatenate([M_even, M_odd], axis=1)                  # (L, 2*C*Lh)
    bias = np.repeat(np.asarray(bc, np.float32), Lh).reshape(1, C * Lh)
    bias_cat = np.concatenate([bias, bias], axis=1)                  # (1, 2*C*Lh)
    return jnp.asarray(M_cat), jnp.asarray(bias_cat)


def _choose_tb(b_pad8, target):
    """Batch tile: multiple of 8, <= target, >= 2 grid steps when b_pad8 >= 16
    (so v7x's two TensorCores both get work), and round-up pad waste <= ~10%."""
    target = max(8, (target // 8) * 8)
    if b_pad8 < 16:
        return b_pad8
    tb_cap = max(8, ((b_pad8 // 2) // 8) * 8)   # at least 2 grid steps
    tb = min(target, tb_cap)
    while tb > 8 and ((-b_pad8) % tb) * 10 > b_pad8:
        tb -= 8                                  # keep pad waste under ~10%
    return tb


def cnn_mlp_forward(x, params, output_size, *, tb=2048):
    (m_cat, bc_cat, w1p, b1, w2, b2, w3p, b3p) = params
    B, L = x.shape
    O_pad = w3p.shape[1]                         # lane-dense padded class dim

    # Pad batch to a multiple of 8 sublanes and of the (adaptive) batch tile.
    b_pad8 = ((B + 7) // 8) * 8
    tb = _choose_tb(b_pad8, tb)
    b_pad = ((b_pad8 + tb - 1) // tb) * tb
    if b_pad != B:
        x = jnp.pad(x, ((0, b_pad - B), (0, 0)))

    const2 = lambda i: (0, 0)
    out = pl.pallas_call(
        cnn_mlp_kernel,
        out_shape=jax.ShapeDtypeStruct((b_pad, O_pad), jnp.float32),
        grid=(b_pad // tb,),
        in_specs=[
            pl.BlockSpec((tb, L), lambda i: (i, 0)),        # x: batch-tiled
            pl.BlockSpec(m_cat.shape, const2),              # weights: resident
            pl.BlockSpec(bc_cat.shape, const2),
            pl.BlockSpec(w1p.shape, const2),
            pl.BlockSpec(b1.shape, const2),
            pl.BlockSpec(w2.shape, const2),
            pl.BlockSpec(b2.shape, const2),
            pl.BlockSpec(w3p.shape, const2),
            pl.BlockSpec(b3p.shape, const2),
        ],
        out_specs=pl.BlockSpec((tb, O_pad), lambda i: (i, 0)),  # lane-dense store
        compiler_params=pltpu.CompilerParams(
            dimension_semantics=("parallel",)),             # v7x: 2 TCs
    )(x, m_cat, bc_cat, w1p, b1, w2, b2, w3p, b3p)
    return out[:B, :output_size]


# -------------------------------------------------------------- pure-JAX ref -
def ref_forward(x, wc, bc, w1, b1, w2, b2, w3, b3):
    B, L = x.shape
    C = wc.shape[0]
    xp = jnp.pad(x, ((0, 0), (1, 1)))
    conv = jnp.stack(
        [sum(wc[c, k] * xp[:, k:k + L] for k in range(3)) + bc[c] for c in range(C)],
        axis=1)                                            # (B, C, L)
    r = jnp.maximum(conv, 0.0)
    pooled = jnp.max(r.reshape(B, C, L // 2, 2), axis=-1)   # (B, C, L/2)
    flat = pooled.reshape(B, -1)
    h1 = jnp.maximum(flat @ w1 + b1, 0.0)
    h2 = jnp.maximum(h1 @ w2 + b2, 0.0)
    logits = h2 @ w3 + b3
    return jax.nn.softmax(logits, axis=1)


# -------------------------------------------------------------------- main ---
if __name__ == "__main__":
    # Module hyper-parameters (input_channels must be 1 given x.unsqueeze(1)).
    input_channels = 1
    input_length = 16
    hidden_size1 = 32
    hidden_size2 = 32
    output_size = 10
    batch = 2

    C_out, K = 8, 3
    Lh = input_length // 2
    flat_dim = C_out * Lh                                   # 64
    o_pad = ((output_size + 127) // 128) * 128              # 128 (lane-dense out)

    key = jax.random.PRNGKey(0)
    ks = jax.random.split(key, 9)

    def u(k, shape, fan_in):
        bound = 1.0 / np.sqrt(fan_in)
        return jax.random.uniform(k, shape, jnp.float32, -bound, bound)

    wc = u(ks[0], (C_out, K), input_channels * K)           # conv1.weight (out,1,3) squeezed
    bc = u(ks[1], (C_out,), input_channels * K)             # conv1.bias
    w1 = u(ks[2], (flat_dim, hidden_size1), flat_dim)       # fc1 (stored in x out)
    b1 = u(ks[3], (1, hidden_size1), flat_dim)
    w2 = u(ks[4], (hidden_size1, hidden_size2), hidden_size1)
    b2 = u(ks[5], (1, hidden_size2), hidden_size1)
    w3 = u(ks[6], (hidden_size2, output_size), hidden_size2)
    b3 = u(ks[7], (1, output_size), hidden_size2)

    x = jax.random.normal(ks[8], (batch, input_length), jnp.float32)

    m_cat, bc_cat = build_conv_as_matmul(np.asarray(wc), np.asarray(bc),
                                         input_length)
    # Zero-pad fc1's contraction dim (flat_dim -> 2*flat_dim) so the duplicate
    # half of the fused conv/pool intermediate contributes exactly zero.
    w1_pad = jnp.pad(w1, ((0, flat_dim), (0, 0)))
    # Lane-dense output: zero-pad fc3's columns to 128 and put -1e30 in the
    # padded bias lanes so the in-kernel softmax over 128 lanes is exact.
    w3_pad = jnp.pad(w3, ((0, 0), (0, o_pad - output_size)))
    b3_pad = jnp.concatenate(
        [b3, jnp.full((1, o_pad - output_size), -1e30, jnp.float32)], axis=1)
    params = (m_cat, bc_cat, w1_pad, b1, w2, b2, w3_pad, b3_pad)

    out = cnn_mlp_forward(x, params, output_size)
    out = jax.block_until_ready(out)

    ref = ref_forward(x, wc, bc, w1, b1[0], w2, b2[0], w3, b3[0])
    ref = jax.block_until_ready(ref)

    assert out.shape == (batch, output_size)
    np.testing.assert_allclose(np.asarray(out), np.asarray(ref), rtol=1e-5, atol=1e-5)
    print("KERNEL_OK")
</pallas_src>

<mosaic_0001>
module attributes {stable_mosaic.version = 11 : i64} {
  func.func @cnn_mlp_kernel(%arg0: i32, %arg1: memref<8x16xf32, #tpu.memory_space<vmem>>, %arg2: memref<16x128xf32, #tpu.memory_space<vmem>>, %arg3: memref<1x128xf32, #tpu.memory_space<vmem>>, %arg4: memref<128x32xf32, #tpu.memory_space<vmem>>, %arg5: memref<1x32xf32, #tpu.memory_space<vmem>>, %arg6: memref<32x32xf32, #tpu.memory_space<vmem>>, %arg7: memref<1x32xf32, #tpu.memory_space<vmem>>, %arg8: memref<32x128xf32, #tpu.memory_space<vmem>>, %arg9: memref<1x128xf32, #tpu.memory_space<vmem>>, %arg10: memref<8x128xf32, #tpu.memory_space<vmem>>) attributes {dimension_semantics = [#tpu.dimension_semantics<parallel>], iteration_bounds = array<i64: 1>, scalar_prefetch = 0 : i64, scratch_operands = 0 : i64, tpu.core_type = #tpu.core_type<tc>, window_params = [{transform_indices = @transform_0, window_bounds = array<i64: 8, 16>}, {pipeline_mode = #tpu.pipeline_mode<synchronous>, transform_indices = @transform_1, window_bounds = array<i64: 16, 128>}, {pipeline_mode = #tpu.pipeline_mode<synchronous>, transform_indices = @transform_2, window_bounds = array<i64: 1, 128>}, {pipeline_mode = #tpu.pipeline_mode<synchronous>, transform_indices = @transform_3, window_bounds = array<i64: 128, 32>}, {pipeline_mode = #tpu.pipeline_mode<synchronous>, transform_indices = @transform_4, window_bounds = array<i64: 1, 32>}, {pipeline_mode = #tpu.pipeline_mode<synchronous>, transform_indices = @transform_5, window_bounds = array<i64: 32, 32>}, {pipeline_mode = #tpu.pipeline_mode<synchronous>, transform_indices = @transform_6, window_bounds = array<i64: 1, 32>}, {pipeline_mode = #tpu.pipeline_mode<synchronous>, transform_indices = @transform_7, window_bounds = array<i64: 32, 128>}, {pipeline_mode = #tpu.pipeline_mode<synchronous>, transform_indices = @transform_8, window_bounds = array<i64: 1, 128>}, {transform_indices = @transform_9, window_bounds = array<i64: 8, 128>}]} {
    %c0 = arith.constant 0 : index
    %c0_0 = arith.constant 0 : index
    %0 = vector.load %arg1[%c0, %c0_0] : memref<8x16xf32, #tpu.memory_space<vmem>>, vector<8x16xf32>
    %c0_1 = arith.constant 0 : index
    %c0_2 = arith.constant 0 : index
    %1 = vector.load %arg2[%c0_1, %c0_2] : memref<16x128xf32, #tpu.memory_space<vmem>>, vector<16x128xf32>
    %cst = arith.constant dense<0.000000e+00> : vector<8x128xf32>
    %2 = tpu.matmul %0, %1, %cst {dimension_numbers = #tpu.dot_dimension_numbers<[1], [0], [0], [1], [0, 0, 1, 1], [], []>} : vector<8x16xf32>, vector<16x128xf32>, vector<8x128xf32> -> vector<8x128xf32>
    %c0_3 = arith.constant 0 : index
    %c0_4 = arith.constant 0 : index
    %3 = vector.load %arg3[%c0_3, %c0_4] : memref<1x128xf32, #tpu.memory_space<vmem>>, vector<1x128xf32>
    %4 = vector.broadcast %3 : vector<1x128xf32> to vector<8x128xf32>
    %5 = arith.addf %2, %4 : vector<8x128xf32>
    %c64_i32 = arith.constant 64 : i32
    %6 = tpu.dynamic_rotate %5 by %c64_i32 dim 1 : vector<8x128xf32>, i32 -> vector<8x128xf32>
    %7 = arith.maximumf %5, %6 : vector<8x128xf32>
    %cst_5 = arith.constant 0.000000e+00 : f32
    %8 = vector.broadcast %cst_5 : f32 to vector<8x128xf32>
    %9 = arith.maximumf %7, %8 : vector<8x128xf32>
    %c0_6 = arith.constant 0 : index
    %c0_7 = arith.constant 0 : index
    %10 = vector.load %arg4[%c0_6, %c0_7] : memref<128x32xf32, #tpu.memory_space<vmem>>, vector<128x32xf32>
    %cst_8 = arith.constant dense<0.000000e+00> : vector<8x32xf32>
    %11 = tpu.matmul %9, %10, %cst_8 {dimension_numbers = #tpu.dot_dimension_numbers<[1], [0], [0], [1], [0, 0, 1, 1], [], []>} : vector<8x128xf32>, vector<128x32xf32>, vector<8x32xf32> -> vector<8x32xf32>
    %c0_9 = arith.constant 0 : index
    %c0_10 = arith.constant 0 : index
    %12 = vector.load %arg5[%c0_9, %c0_10] : memref<1x32xf32, #tpu.memory_space<vmem>>, vector<1x32xf32>
    %13 = vector.broadcast %12 : vector<1x32xf32> to vector<8x32xf32>
    %14 = arith.addf %11, %13 : vector<8x32xf32>
    %cst_11 = arith.constant 0.000000e+00 : f32
    %15 = vector.broadcast %cst_11 : f32 to vector<8x32xf32>
    %16 = arith.maximumf %14, %15 : vector<8x32xf32>
    %c0_12 = arith.constant 0 : index
    %c0_13 = arith.constant 0 : index
    %17 = vector.load %arg6[%c0_12, %c0_13] : memref<32x32xf32, #tpu.memory_space<vmem>>, vector<32x32xf32>
    %cst_14 = arith.constant dense<0.000000e+00> : vector<8x32xf32>
    %18 = tpu.matmul %16, %17, %cst_14 {dimension_numbers = #tpu.dot_dimension_numbers<[1], [0], [0], [1], [0, 0, 1, 1], [], []>} : vector<8x32xf32>, vector<32x32xf32>, vector<8x32xf32> -> vector<8x32xf32>
    %c0_15 = arith.constant 0 : index
    %c0_16 = arith.constant 0 : index
    %19 = vector.load %arg7[%c0_15, %c0_16] : memref<1x32xf32, #tpu.memory_space<vmem>>, vector<1x32xf32>
    %20 = vector.broadcast %19 : vector<1x32xf32> to vector<8x32xf32>
    %21 = arith.addf %18, %20 : vector<8x32xf32>
    %cst_17 = arith.constant 0.000000e+00 : f32
    %22 = vector.broadcast %cst_17 : f32 to vector<8x32xf32>
    %23 = arith.maximumf %21, %22 : vector<8x32xf32>
    %c0_18 = arith.constant 0 : index
    %c0_19 = arith.constant 0 : index
    %24 = vector.load %arg8[%c0_18, %c0_19] : memref<32x128xf32, #tpu.memory_space<vmem>>, vector<32x128xf32>
    %cst_20 = arith.constant dense<0.000000e+00> : vector<8x128xf32>
    %25 = tpu.matmul %23, %24, %cst_20 {dimension_numbers = #tpu.dot_dimension_numbers<[1], [0], [0], [1], [0, 0, 1, 1], [], []>} : vector<8x32xf32>, vector<32x128xf32>, vector<8x128xf32> -> vector<8x128xf32>
    %c0_21 = arith.constant 0 : index
    %c0_22 = arith.constant 0 : index
    %26 = vector.load %arg9[%c0_21, %c0_22] : memref<1x128xf32, #tpu.memory_space<vmem>>, vector<1x128xf32>
    %27 = vector.broadcast %26 : vector<1x128xf32> to vector<8x128xf32>
    %28 = arith.addf %25, %27 : vector<8x128xf32>
    %cst_23 = arith.constant dense<0xFF800000> : vector<8xf32>
    %29 = vector.multi_reduction <maximumf>, %28, %cst_23 [1] : vector<8x128xf32> to vector<8xf32>
    %30 = vector.shape_cast %29 : vector<8xf32> to vector<8x1xf32>
    %31 = vector.broadcast %30 : vector<8x1xf32> to vector<8x128xf32>
    %32 = arith.subf %28, %31 : vector<8x128xf32>
    %33 = math.exp %32 : vector<8x128xf32>
    %cst_24 = arith.constant dense<0.000000e+00> : vector<8xf32>
    %34 = vector.multi_reduction <add>, %33, %cst_24 [1] : vector<8x128xf32> to vector<8xf32>
    %35 = vector.shape_cast %34 : vector<8xf32> to vector<8x1xf32>
    %36 = tpu.reciprocal %35 {approx = true} : vector<8x1xf32> -> vector<8x1xf32>
    %37 = arith.mulf %35, %36 : vector<8x1xf32>
    %cst_25 = arith.constant 2.000000e+00 : f32
    %38 = vector.broadcast %cst_25 : f32 to vector<8x1xf32>
    %39 = arith.subf %38, %37 : vector<8x1xf32>
    %40 = arith.mulf %36, %39 : vector<8x1xf32>
    %41 = vector.broadcast %40 : vector<8x1xf32> to vector<8x128xf32>
    %42 = arith.mulf %33, %41 : vector<8x128xf32>
    %c0_26 = arith.constant 0 : index
    %c0_27 = arith.constant 0 : index
    %43 = vector.load %arg10[%c0_26, %c0_27] : memref<8x128xf32, #tpu.memory_space<vmem>>, vector<8x128xf32>
    tpu.vector_store %arg10[%c0_26, %c0_27], %42 {strides = array<i32>} : memref<8x128xf32, #tpu.memory_space<vmem>>, vector<8x128xf32>,
    return
  }
  func.func @transform_0(%arg0: i32) -> (i32, i32) {
    %c0_i32 = arith.constant 0 : i32
    %c0_i32_0 = arith.constant 0 : i32
    return %arg0, %c0_i32 : i32, i32
  }
  func.func @transform_1(%arg0: i32) -> (i32, i32) {
    %c0_i32 = arith.constant 0 : i32
    %c0_i32_0 = arith.constant 0 : i32
    %c0_i32_1 = arith.constant 0 : i32
    return %c0_i32, %c0_i32_0 : i32, i32
  }
  func.func @transform_2(%arg0: i32) -> (i32, i32) {
    %c0_i32 = arith.constant 0 : i32
    %c0_i32_0 = arith.constant 0 : i32
    %c0_i32_1 = arith.constant 0 : i32
    return %c0_i32, %c0_i32_0 : i32, i32
  }
  func.func @transform_3(%arg0: i32) -> (i32, i32) {
    %c0_i32 = arith.constant 0 : i32
    %c0_i32_0 = arith.constant 0 : i32
    %c0_i32_1 = arith.constant 0 : i32
    return %c0_i32, %c0_i32_0 : i32, i32
  }
  func.func @transform_4(%arg0: i32) -> (i32, i32) {
    %c0_i32 = arith.constant 0 : i32
    %c0_i32_0 = arith.constant 0 : i32
    %c0_i32_1 = arith.constant 0 : i32
    return %c0_i32, %c0_i32_0 : i32, i32
  }
  func.func @transform_5(%arg0: i32) -> (i32, i32) {
    %c0_i32 = arith.constant 0 : i32
    %c0_i32_0 = arith.constant 0 : i32
    %c0_i32_1 = arith.constant 0 : i32
    return %c0_i32, %c0_i32_0 : i32, i32
  }
  func.func @transform_6(%arg0: i32) -> (i32, i32) {
    %c0_i32 = arith.constant 0 : i32
    %c0_i32_0 = arith.constant 0 : i32
    %c0_i32_1 = arith.constant 0 : i32
    return %c0_i32, %c0_i32_0 : i32, i32
  }
  func.func @transform_7(%arg0: i32) -> (i32, i32) {
    %c0_i32 = arith.constant 0 : i32
    %c0_i32_0 = arith.constant 0 : i32
    %c0_i32_1 = arith.constant 0 : i32
    return %c0_i32, %c0_i32_0 : i32, i32
  }
  func.func @transform_8(%arg0: i32) -> (i32, i32) {
    %c0_i32 = arith.constant 0 : i32
    %c0_i32_0 = arith.constant 0 : i32
    %c0_i32_1 = arith.constant 0 : i32
    return %c0_i32, %c0_i32_0 : i32, i32
  }
  func.func @transform_9(%arg0: i32) -> (i32, i32) {
    %c0_i32 = arith.constant 0 : i32
    %c0_i32_0 = arith.constant 0 : i32
    return %arg0, %c0_i32 : i32, i32
  }
}

</mosaic_0001>

<bundles_post_ra>
// kernel: tpu_custom_call.1
= control target key start
LH: loop header
LB: loop body
LE: loop exit
PB: predicated region body
PF: predicated region fallthrough
CT: control target
= control target key end

     0   :  { %vm40_vm0 = vcmask 130048   ;;  %s389_s0 = inlined_call_operand.vmem [shape: f32[8,16], index: 0, kind: input, shape index: {}]   ;;  %s390_s1 = inlined_call_operand.vmem [shape: f32[16,128], index: 1, kind: input, shape index: {}]   ;;  %s391_s2 = inlined_call_operand.vmem [shape: f32[1,128], index: 2, kind: input, shape index: {}]   ;;  %s392_s3 = inlined_call_operand.vmem [shape: f32[128,32], index: 3, kind: input, shape index: {}]   ;;  %s393_s4 = inlined_call_operand.vmem [shape: f32[1,32], index: 4, kind: input, shape index: {}]   ;;  %s394_s5 = inlined_call_operand.vmem [shape: f32[32,32], index: 5, kind: input, shape index: {}]   ;;  %s395_s6 = inlined_call_operand.vmem [shape: f32[1,32], index: 6, kind: input, shape index: {}]   ;;  %s396_s7 = inlined_call_operand.vmem [shape: f32[32,128], index: 7, kind: input, shape index: {}]   ;;  %s397_s8 = inlined_call_operand.vmem [shape: f32[1,128], index: 8, kind: input, shape index: {}]   ;;  %s398_s9 = inlined_call_operand.hbm [shape: f32[8,128], index: 9, kind: output, shape index: {}]  }
   0x1   :  { %v35_v0 = vld [vmem:[%s390_s1 + $0x8] sm:$0xff]  ;;  %v34_v1 = vld [vmem:[%s390_s1] sm:$0xff] }
   0x2   :  { %58 = vmatpush.msra.mxu0 %v35_v0  ;;  %v33_v2 = vld [vmem:[%s389_s0] sm:$0xff] }
   0x4   :  { %59 = vmatpush.msra.mxu0 %v34_v1 }
   0x5   :  { %14 = vsyncpa [#allocation3], 0  ;;  %202 = vmatmul.msk.f32.vlgmr.msra.gmra.mxu0 %vm40_vm0, %v33_v2  ;;  %v83_v3 = vld [vmem:[%s392_s3 + $0x78] sm:$0xff]  ;;  %v82_v4 = vld [vmem:[%s392_s3 + $0x70] sm:$0xff]  ;;  %s241_s0 = smov 64   ;;  %vm117_vm1 = vcmask 261120  }
   0x6   :  { %88 = vmatpush.msra.mxu1 %v83_v3  ;;  %v81_v5 = vld [vmem:[%s392_s3 + $0x68] sm:$0xff]  ;;  %v80_v6 = vld [vmem:[%s392_s3 + $0x60] sm:$0xff]  ;;  %v79_v7 = vld [vmem:[%s392_s3 + $0x58] sm:$0xff] }
   0x7   :  { %v78_v8 = vld [vmem:[%s392_s3 + $0x50] sm:$0xff]  ;;  %v77_v9 = vld [vmem:[%s392_s3 + $0x48] sm:$0xff]  ;;  %v76_v10 = vld [vmem:[%s392_s3 + $0x40] sm:$0xff] }
   0x8   :  { %89 = vmatpush.msra.mxu1 %v82_v4  ;;  %v75_v11 = vld [vmem:[%s392_s3 + $0x38] sm:$0xff]  ;;  %v74_v12 = vld [vmem:[%s392_s3 + $0x30] sm:$0xff]  ;;  %v73_v13 = vld [vmem:[%s392_s3 + $0x28] sm:$0xff] }
   0x9   :  { %v72_v14 = vld [vmem:[%s392_s3 + $0x20] sm:$0xff]  ;;  %v71_v15 = vld [vmem:[%s392_s3 + $0x18] sm:$0xff]  ;;  %v70_v16 = vld [vmem:[%s392_s3 + $0x10] sm:$0xff] }
   0xa   :  { %90 = vmatpush.msra.mxu1 %v81_v5  ;;  %v207_v17 = vld [vmem:[%s391_s2] ss:$0 sm:$0xff]  ;;  %v69_v20 = vld [vmem:[%s392_s3 + $0x8] sm:$0xff]  ;;  %v112_v22 = vld [vmem:[%s394_s5 + $0x18] sm:$0xff] }
   0xb   :  { %v68_v21 = vld [vmem:[%s392_s3] sm:$0xff]  ;;  %133 = vmatpush.msra.mxu2 %v112_v22  ;;  %v111_v26 = vld [vmem:[%s394_s5 + $0x10] sm:$0xff]  ;;  %v110_v27 = vld [vmem:[%s394_s5 + $0x8] sm:$0xff] }
   0xc   :  { %91 = vmatpush.msra.mxu1 %v80_v6  ;;  %v109_v28 = vld [vmem:[%s394_s5] sm:$0xff]  ;;  %v145_v29 = vld [vmem:[%s396_s7 + $0x18] sm:$0xff]  ;;  %v144_v34 = vld [vmem:[%s396_s7 + $0x10] sm:$0xff] }
   0xd   :  { %134 = vmatpush.msra.mxu2 %v111_v26  ;;  %165 = vmatpush.msra.mxu3 %v145_v29  ;;  %v208_v30 = vld [vmem:[%s393_s4] ss:$0 sm:$0xff]  ;;  %v143_v35 = vld [vmem:[%s396_s7 + $0x8] sm:$0xff] }
   0xe   :  { %92 = vmatpush.msra.mxu1 %v79_v7  ;;  %v142_v36 = vld [vmem:[%s396_s7] sm:$0xff] }
   0xf   :  { %135 = vmatpush.msra.mxu2 %v110_v27  ;;  %166 = vmatpush.msra.mxu3 %v144_v34  ;;  %v209_v37 = vld [vmem:[%s395_s6] ss:$0 sm:$0xff]  ;;  %s242_s6 = smov [#allocation2]  }
  0x10   :  { %93 = vmatpush.msra.mxu1 %v78_v8  ;;  %v210_v41 = vld [vmem:[%s397_s8] ss:$0 sm:$0xff]  ;;  %s191_s7 = sshll.u32 %s242_s6, 4  ;;  %s193_s8 = sshll.u32 %s398_s9, 4  ;;  %s192_s7 = int_to_ptr.vmem [resolvable:$true] %s191_s7  ;;  %s194_s8 = int_to_ptr.hbm [resolvable:$true] %s193_s8 }
  0x11   :  { %136 = vmatpush.msra.mxu2 %v109_v28  ;;  %167 = vmatpush.msra.mxu3 %v143_v35 }
  0x12   :  { %94 = vmatpush.msra.mxu1 %v77_v9 }
  0x13   :  { %168 = vmatpush.msra.mxu3 %v142_v36 }
  0x14   :  { %95 = vmatpush.msra.mxu1 %v76_v10 }
  0x16   :  { %96 = vmatpush.msra.mxu1 %v75_v11 }
  0x18   :  { %97 = vmatpush.msra.mxu1 %v74_v12 }
  0x1a   :  { %98 = vmatpush.msra.mxu1 %v73_v13 }
  0x1c   :  { %99 = vmatpush.msra.mxu1 %v72_v14 }
  0x1e   :  { %100 = vmatpush.msra.mxu1 %v71_v15 }
  0x20   :  { %101 = vmatpush.msra.mxu1 %v70_v16 }
  0x22   :  { %102 = vmatpush.msra.mxu1 %v69_v20 }
  0x24   :  { %103 = vmatpush.msra.mxu1 %v68_v21 }
  0x82   :  { %v61_v18 = vpop.f32.mrf.mxu0 }
  0x83   :  { %v62_v19 = vadd.f32 %v207_v17, %v61_v18 }
  0x85   :  { %64 = vrot.lane.b32.xlu0 %v62_v19, %s241_s0 }
  0xf7   :  { %v65_v23 = vpop.permute.xlu0 %64 }
  0xf8   :  { %v66_v24 = vmax.f32 %v62_v19, %v65_v23 }
  0xfa   :  { %v67_v25 = vmax.f32 %v66_v24, 0.0 }
  0xfc   :  { %104 = vmatmul.f32.vlgmr.msra.gmra.mxu1 %v67_v25 }
 0x179   :  { %v105_v31 = vpop.f32.mrf.mxu1 }
 0x17a   :  { %v106_v32 = vadd.f32 %v208_v30, %v105_v31 }
 0x17c   :  { %v108_v33 = vmax.f32 %v106_v32, 0.0 }
 0x17e   :  { %203 = vmatmul.msk.f32.vlgmr.msra.gmra.mxu2 %vm117_vm1, %v108_v33 }
 0x201   :  { %v138_v38 = vpop.f32.mrf.mxu2 }
 0x202   :  { %v139_v39 = vadd.f32 %v209_v37, %v138_v38 }
 0x204   :  { %v141_v40 = vmax.f32 %v139_v39, 0.0 }
 0x206   :  { %204 = vmatmul.msk.f32.vlgmr.msra.gmra.mxu3 %vm117_vm1, %v141_v40 }
 0x289   :  { %v170_v42 = vpop.f32.mrf.mxu3 }
 0x28a   :  { %v171_v43 = vadd.f32 %v210_v41, %v170_v42 }
 0x28c   :  { %173 = vmax.xlane.f32.xlu0 %v171_v43 }
 0x2ff   :  { %v174_v44 = vpop.xlane.xlu0 %173 }
 0x300   :  { %v175_v45 = vsub.f32 %v171_v43, %v174_v44 }
 0x302   :  { %v176_v46 = vmul.f32 1.442695, %v175_v45 }
 0x304   :  { %211 = vpow2.f32 %v176_v46 }
 0x30a   :  { %v212_v47 = vpop.eup %211 }
 0x30b   :  { %178 = vadd.xlane.f32.xlu1 %v212_v47 }
 0x37e   :  { %v179_v48 = vpop.xlane.xlu1 %178 }
 0x37f   :  { %213 = vrcp.f32 %v179_v48 }
 0x385   :  { %v214_v49 = vpop.eup %213 }
 0x386   :  { %v181_v50 = vmul.f32 %v214_v49, %v179_v48 }
 0x388   :  { %v182_v51 = vsub.f32 2.0, %v181_v50 }
 0x38a   :  { %v183_v52 = vmul.f32 %v214_v49, %v182_v51 }
 0x38c   :  { %v184_v53 = vmul.f32 %v212_v47, %v183_v52 }
 0x38e   :  { %185 = vst [vmem:[#allocation2] sm:$0xff] %v184_v53 }
 0x38f   :  { %196 = dma.vmem_to_hbm [thread:$0]  %s192_s7, 128, %s194_s8, [#allocation3]  }
 0x390   :  { %239 = dma.done.wait [#allocation3], 128  }
 0x391   :  { %240 = vsyncadd [#allocation3], 4294967168 }
 0x392   :  { %201 = vsyncpa [#allocation3], 1 }

</bundles_post_ra>
